<compile_context>
chip_gen: v6e
topology: v6e:2x2x1
jax: 0.10.0
libtpu: 0.0.40
codegen_flags: <defaults>
</compile_context>

<pallas_src>
import functools

import jax
import jax.numpy as jnp
from jax.experimental import pallas as pl
from jax.experimental.pallas import tpu as pltpu


def _round_up(x, m):
    return (x + m - 1) // m * m


# ----------------------------------------------------------------------------
# Tiled matmul + bias kernel:  out = x @ w + b
#   grid = (N/tm, M/tn, K/tk), f32 accumulator in VMEM scratch.
# Used for (a) hoisted per-layer input projections x @ W_ih^T + (b_ih+b_hh)
# and (b) the final Linear projection to vocab logits.
# ----------------------------------------------------------------------------
def _matmul_bias_kernel(x_ref, w_ref, b_ref, o_ref, acc_ref):
    @pl.when(pl.program_id(2) == 0)
    def _():
        acc_ref[...] = jnp.zeros_like(acc_ref)

    acc_ref[...] += jnp.dot(x_ref[...], w_ref[...],
                            preferred_element_type=jnp.float32)

    @pl.when(pl.program_id(2) == pl.num_programs(2) - 1)
    def _():
        o_ref[...] = (acc_ref[...] + b_ref[...]).astype(o_ref.dtype)


def matmul_bias(x, w_t, b, *, tm=128, tn=128, tk=128):
    """x: (N, K); w_t: (K, M); b: (1, M) -> (N, M) float32."""
    N, K = x.shape
    _, M = w_t.shape
    Np, Kp, Mp = _round_up(N, tm), _round_up(K, tk), _round_up(M, tn)
    if (N, K) != (Np, Kp):
        x = jnp.pad(x, ((0, Np - N), (0, Kp - K)))
    if (K, M) != (Kp, Mp):
        w_t = jnp.pad(w_t, ((0, Kp - K), (0, Mp - M)))
    if M != Mp:
        b = jnp.pad(b, ((0, 0), (0, Mp - M)))

    out = pl.pallas_call(
        _matmul_bias_kernel,
        grid=(Np // tm, Mp // tn, Kp // tk),
        in_specs=[
            pl.BlockSpec((tm, tk), lambda i, j, k: (i, k)),
            pl.BlockSpec((tk, tn), lambda i, j, k: (k, j)),
            pl.BlockSpec((1, tn), lambda i, j, k: (0, j)),
        ],
        out_specs=pl.BlockSpec((tm, tn), lambda i, j, k: (i, j)),
        out_shape=jax.ShapeDtypeStruct((Np, Mp), jnp.float32),
        scratch_shapes=[pltpu.VMEM((tm, tn), jnp.float32)],
        compiler_params=pltpu.CompilerParams(
            dimension_semantics=("parallel", "parallel", "arbitrary")),
    )(x, w_t, b)
    return out[:N, :M]


# ----------------------------------------------------------------------------
# LSTM recurrence kernel (input projection already hoisted):
#   per time-chunk block of precomputed gates xg = x @ W_ih^T + b,
#   in-kernel unrolled loop over the chunk's timesteps:
#     gates_t = xg_t + h_{t-1} @ W_hh^T
#     i,f,g,o = split(gates_t); c_t = f*c + i*g; h_t = o*tanh(c_t)
# h/c state carried across chunks in VMEM scratch. Hp is a multiple of 128 so
# every gate slice is a contiguous lane-aligned span and stores are lane-dense.
# ----------------------------------------------------------------------------
def _lstm_rec_kernel(xg_ref, w_hh_ref, out_ref, h_scr, c_scr):
    @pl.when(pl.program_id(0) == 0)
    def _():
        h_scr[...] = jnp.zeros_like(h_scr)
        c_scr[...] = jnp.zeros_like(c_scr)

    Hp = h_scr.shape[-1]
    t_chunk = xg_ref.shape[0]
    w_hh = w_hh_ref[...]                      # hoisted weight load (Hp, 4Hp)

    for t in range(t_chunk):                  # static, fully unrolled
        h = h_scr[...]
        gates = xg_ref[t] + jnp.dot(h, w_hh,
                                    preferred_element_type=jnp.float32)
        i_g = jax.nn.sigmoid(gates[:, 0 * Hp:1 * Hp])
        f_g = jax.nn.sigmoid(gates[:, 1 * Hp:2 * Hp])
        g_g = jnp.tanh(gates[:, 2 * Hp:3 * Hp])
        o_g = jax.nn.sigmoid(gates[:, 3 * Hp:4 * Hp])

        c_new = f_g * c_scr[...] + i_g * g_g
        h_new = o_g * jnp.tanh(c_new)

        c_scr[...] = c_new
        h_scr[...] = h_new
        out_ref[t] = h_new.astype(out_ref.dtype)


def lstm_recurrence(xg, w_hh_t, t_chunk):
    """xg: (Tpad, Bp, 4Hp) precomputed input gates; w_hh_t: (Hp, 4Hp)."""
    Tpad, Bp, G = xg.shape
    Hp = w_hh_t.shape[0]
    assert Tpad % t_chunk == 0
    return pl.pallas_call(
        _lstm_rec_kernel,
        grid=(Tpad // t_chunk,),
        in_specs=[
            pl.BlockSpec((t_chunk, Bp, G), lambda c: (c, 0, 0)),
            pl.BlockSpec((Hp, G), lambda c: (0, 0)),
        ],
        out_specs=pl.BlockSpec((t_chunk, Bp, Hp), lambda c: (c, 0, 0)),
        out_shape=jax.ShapeDtypeStruct((Tpad, Bp, Hp), jnp.float32),
        scratch_shapes=[
            pltpu.VMEM((Bp, Hp), jnp.float32),   # h state (carried over chunks)
            pltpu.VMEM((Bp, Hp), jnp.float32),   # c state
        ],
        compiler_params=pltpu.CompilerParams(
            dimension_semantics=("arbitrary",)),  # serial time recurrence
    )(xg, w_hh_t)


# ----------------------------------------------------------------------------
# Full Decoder forward
# ----------------------------------------------------------------------------
T_CHUNK = 8          # timesteps processed per grid invocation
LANE = 128           # lane / MXU alignment
SUBLANE = 8          # f32 sublane alignment


def decoder_forward(params, features, captions):
    """
    features: (B, E) float32
    captions: (T, B) int32
    returns:  (T+1, B, V) float32
    """
    dims = params["dims"]
    E, H, V = dims["E"], dims["H"], dims["V"]
    Ep = params["embedding"].shape[1]
    Hp = params["lstm"][0]["w_hh_t"].shape[0]

    B = features.shape[0]
    T = captions.shape[0]
    Tp1 = T + 1
    Bp = _round_up(B, SUBLANE)
    Tpad = _round_up(Tp1, T_CHUNK)

    # Embedding lookup (gather) — plain-JAX glue; table is pre-padded to Ep.
    emb = jnp.take(params["embedding"], captions, axis=0)          # (T, B, Ep)
    # Dropout p=0.5: eval-mode identity.
    # TODO(synk): training-mode stochastic dropout intentionally omitted.
    feat = jnp.pad(features, ((0, 0), (0, Ep - E)))                # (B, Ep)
    x = jnp.concatenate([feat[None, :, :], emb], axis=0)           # (Tp1, B, Ep)
    # Pad batch to sublane multiple and time to chunk multiple (zeros are
    # numerically inert: padded weight rows/cols are zero, outputs sliced off).
    x = jnp.pad(x, ((0, Tpad - Tp1), (0, Bp - B), (0, 0)))         # (Tpad, Bp, Ep)

    # Stacked LSTM layers.
    for layer in params["lstm"]:
        In = x.shape[-1]
        # Hoisted input projection + fused bias for all timesteps (one big
        # MXU-efficient matmul instead of T tiny per-step ones).
        xg = matmul_bias(x.reshape(Tpad * Bp, In),
                         layer["w_ih_t"], layer["b"])              # (Tpad*Bp, 4Hp)
        xg = xg.reshape(Tpad, Bp, 4 * Hp)
        # Serial recurrence: only h @ W_hh per step, chunked over time.
        x = lstm_recurrence(xg, layer["w_hh_t"], T_CHUNK)          # (Tpad, Bp, Hp)

    # Final Linear projection to vocab logits (tiled, lane-dense stores).
    logits = matmul_bias(x.reshape(Tpad * Bp, Hp),
                         params["linear_w_t"], params["linear_b"])
    Vp = params["linear_w_t"].shape[1]
    logits = logits.reshape(Tpad, Bp, Vp)[:Tp1, :B, :V]
    return logits


# ----------------------------------------------------------------------------
# Parameters: raw (PyTorch-shaped) init + padded/transposed preparation.
# ----------------------------------------------------------------------------
def init_raw_params(key, embed_size, hidden_size, vocab_size, num_layers):
    keys = jax.random.split(key, 3 + 4 * num_layers)
    k_it = iter(keys)
    scale = 1.0 / jnp.sqrt(jnp.float32(hidden_size))

    raw = {
        "embedding": jax.random.normal(
            next(k_it), (vocab_size, embed_size), jnp.float32) * 0.02,
        "lstm": [],
        "linear_w": jax.random.uniform(
            next(k_it), (vocab_size, hidden_size), jnp.float32, -scale, scale),
        "linear_b": jax.random.uniform(
            next(k_it), (vocab_size,), jnp.float32, -scale, scale),
    }
    for l in range(num_layers):
        in_size = embed_size if l == 0 else hidden_size
        raw["lstm"].append({
            "w_ih": jax.random.uniform(next(k_it), (4 * hidden_size, in_size),
                                       jnp.float32, -scale, scale),
            "w_hh": jax.random.uniform(next(k_it), (4 * hidden_size, hidden_size),
                                       jnp.float32, -scale, scale),
            "b_ih": jax.random.uniform(next(k_it), (4 * hidden_size,),
                                       jnp.float32, -scale, scale),
            "b_hh": jax.random.uniform(next(k_it), (4 * hidden_size,),
                                       jnp.float32, -scale, scale),
        })
    return raw


def prepare_params(raw, embed_size, hidden_size, vocab_size):
    """Pad hidden/embed/vocab dims to lane multiples and transpose weights.
    Each gate occupies a contiguous Hp (=128-multiple) span; padded rows/cols
    are zero so padded hidden units stay exactly zero through the recurrence."""
    E, H, V = embed_size, hidden_size, vocab_size
    Ep, Hp, Vp = _round_up(E, LANE), _round_up(H, LANE), _round_up(V, LANE)

    def pad_gate_weight(w, in_dim, in_pad):
        # w: (4H, in_dim), gate-major rows -> (in_pad, 4Hp) transposed, padded.
        w4 = w.reshape(4, H, in_dim)
        w4 = jnp.pad(w4, ((0, 0), (0, Hp - H), (0, in_pad - in_dim)))
        return w4.reshape(4 * Hp, in_pad).T

    params = {
        "embedding": jnp.pad(raw["embedding"], ((0, 0), (0, Ep - E))),
        "lstm": [],
        "linear_w_t": jnp.pad(raw["linear_w"].T,
                              ((0, Hp - H), (0, Vp - V))),       # (Hp, Vp)
        "linear_b": jnp.pad(raw["linear_b"], (0, Vp - V))[None, :],
        "dims": {"E": E, "H": H, "V": V},
    }
    for l, lp in enumerate(raw["lstm"]):
        in_dim = E if l == 0 else H
        in_pad = Ep if l == 0 else Hp
        b = (lp["b_ih"] + lp["b_hh"]).reshape(4, H)
        params["lstm"].append({
            "w_ih_t": pad_gate_weight(lp["w_ih"], in_dim, in_pad),  # (Inp, 4Hp)
            "w_hh_t": pad_gate_weight(lp["w_hh"], H, Hp),           # (Hp, 4Hp)
            "b": jnp.pad(b, ((0, 0), (0, Hp - H))).reshape(1, 4 * Hp),
        })
    return params


# ----------------------------------------------------------------------------
# Pure-JAX reference (PyTorch nn.LSTM semantics) for correctness check.
# ----------------------------------------------------------------------------
def decoder_reference(raw, features, captions, hidden_size, num_layers):
    H = hidden_size
    emb = jnp.take(raw["embedding"], captions, axis=0)
    x = jnp.concatenate([features[None], emb], axis=0)
    B = x.shape[1]
    for l in range(num_layers):
        lp = raw["lstm"][l]
        w_ih, w_hh = lp["w_ih"], lp["w_hh"]
        b = lp["b_ih"] + lp["b_hh"]

        def step(carry, xt):
            h, c = carry
            gates = xt @ w_ih.T + h @ w_hh.T + b
            i = jax.nn.sigmoid(gates[:, 0:H])
            f = jax.nn.sigmoid(gates[:, H:2 * H])
            g = jnp.tanh(gates[:, 2 * H:3 * H])
            o = jax.nn.sigmoid(gates[:, 3 * H:4 * H])
            c = f * c + i * g
            h = o * jnp.tanh(c)
            return (h, c), h

        init = (jnp.zeros((B, H), jnp.float32), jnp.zeros((B, H), jnp.float32))
        _, x = jax.lax.scan(step, init, x)
    return x @ raw["linear_w"].T + raw["linear_b"]


if __name__ == "__main__":
    embed_size, hidden_size, vocab_size, num_layers = 32, 32, 128, 2
    T, B = 8, 2

    key = jax.random.PRNGKey(0)
    k_par, k_feat, k_cap = jax.random.split(key, 3)

    raw = init_raw_params(k_par, embed_size, hidden_size, vocab_size, num_layers)
    params = prepare_params(raw, embed_size, hidden_size, vocab_size)

    features = jax.random.normal(k_feat, (B, embed_size), jnp.float32)
    captions = jax.random.randint(k_cap, (T, B), 0, vocab_size, jnp.int32)

    out = decoder_forward(params, features, captions)
    out = jax.block_until_ready(out)
    assert out.shape == (T + 1, B, vocab_size), out.shape

    ref = decoder_reference(raw, features, captions, hidden_size, num_layers)
    ref = jax.block_until_ready(ref)
    max_err = float(jnp.max(jnp.abs(out - ref)))
    assert max_err < 2e-2, f"max abs error vs reference: {max_err}"

    print("KERNEL_OK")
</pallas_src>

<mosaic_0001>
module attributes {stable_mosaic.version = 11 : i64} {
  func.func @_matmul_bias_kernel(%arg0: i32, %arg1: i32, %arg2: i32, %arg3: memref<128x128xf32, #tpu.memory_space<vmem>>, %arg4: memref<128x128xf32, #tpu.memory_space<vmem>>, %arg5: memref<1x128xf32, #tpu.memory_space<vmem>>, %arg6: memref<128x128xf32, #tpu.memory_space<vmem>>, %arg7: memref<128x128xf32, #tpu.memory_space<vmem>>) attributes {dimension_semantics = [#tpu.dimension_semantics<parallel>, #tpu.dimension_semantics<parallel>, #tpu.dimension_semantics<arbitrary>], iteration_bounds = array<i64: 1, 4, 1>, scalar_prefetch = 0 : i64, scratch_operands = 1 : i64, tpu.core_type = #tpu.core_type<tc>, window_params = [{transform_indices = @transform_0, window_bounds = array<i64: 128, 128>}, {transform_indices = @transform_1, window_bounds = array<i64: 128, 128>}, {transform_indices = @transform_2, window_bounds = array<i64: 1, 128>}, {transform_indices = @transform_3, window_bounds = array<i64: 128, 128>}]} {
    %c0_i32 = arith.constant 0 : i32
    %0 = arith.cmpi eq, %arg2, %c0_i32 : i32
    %1 = arith.extui %0 : i1 to i32
    %c0_i32_0 = arith.constant 0 : i32
    %2 = arith.cmpi ne, %1, %c0_i32_0 : i32
    scf.if %2 {
      %cst_10 = arith.constant 0.000000e+00 : f32
      %12 = vector.broadcast %cst_10 : f32 to vector<128x128xf32>
      %c0_11 = arith.constant 0 : index
      %c0_12 = arith.constant 0 : index
      %13 = vector.load %arg7[%c0_11, %c0_12] : memref<128x128xf32, #tpu.memory_space<vmem>>, vector<128x128xf32>
      tpu.vector_store %arg7[%c0_11, %c0_12], %12 {strides = array<i32>} : memref<128x128xf32, #tpu.memory_space<vmem>>, vector<128x128xf32>,
    } else {
    }
    %c0 = arith.constant 0 : index
    %c0_1 = arith.constant 0 : index
    %3 = vector.load %arg7[%c0, %c0_1] : memref<128x128xf32, #tpu.memory_space<vmem>>, vector<128x128xf32>
    %c0_2 = arith.constant 0 : index
    %c0_3 = arith.constant 0 : index
    %4 = vector.load %arg3[%c0_2, %c0_3] : memref<128x128xf32, #tpu.memory_space<vmem>>, vector<128x128xf32>
    %c0_4 = arith.constant 0 : index
    %c0_5 = arith.constant 0 : index
    %5 = vector.load %arg4[%c0_4, %c0_5] : memref<128x128xf32, #tpu.memory_space<vmem>>, vector<128x128xf32>
    %cst = arith.constant dense<0.000000e+00> : vector<128x128xf32>
    %6 = tpu.matmul %4, %5, %cst {dimension_numbers = #tpu.dot_dimension_numbers<[1], [0], [0], [1], [0, 0, 1, 1], [], []>} : vector<128x128xf32>, vector<128x128xf32>, vector<128x128xf32> -> vector<128x128xf32>
    %7 = arith.addf %3, %6 : vector<128x128xf32>
    %c0_6 = arith.constant 0 : index
    %c0_7 = arith.constant 0 : index
    %8 = vector.load %arg7[%c0_6, %c0_7] : memref<128x128xf32, #tpu.memory_space<vmem>>, vector<128x128xf32>
    tpu.vector_store %arg7[%c0_6, %c0_7], %7 {strides = array<i32>} : memref<128x128xf32, #tpu.memory_space<vmem>>, vector<128x128xf32>,
    %c0_i32_8 = arith.constant 0 : i32
    %9 = arith.cmpi eq, %arg2, %c0_i32_8 : i32
    %10 = arith.extui %9 : i1 to i32
    %c0_i32_9 = arith.constant 0 : i32
    %11 = arith.cmpi ne, %10, %c0_i32_9 : i32
    scf.if %11 {
      %c0_10 = arith.constant 0 : index
      %c0_11 = arith.constant 0 : index
      %12 = vector.load %arg7[%c0_10, %c0_11] : memref<128x128xf32, #tpu.memory_space<vmem>>, vector<128x128xf32>
      %c0_12 = arith.constant 0 : index
      %c0_13 = arith.constant 0 : index
      %13 = vector.load %arg5[%c0_12, %c0_13] : memref<1x128xf32, #tpu.memory_space<vmem>>, vector<1x128xf32>
      %14 = vector.broadcast %13 : vector<1x128xf32> to vector<128x128xf32>
      %15 = arith.addf %12, %14 : vector<128x128xf32>
      %c0_14 = arith.constant 0 : index
      %c0_15 = arith.constant 0 : index
      %16 = vector.load %arg6[%c0_14, %c0_15] : memref<128x128xf32, #tpu.memory_space<vmem>>, vector<128x128xf32>
      tpu.vector_store %arg6[%c0_14, %c0_15], %15 {strides = array<i32>} : memref<128x128xf32, #tpu.memory_space<vmem>>, vector<128x128xf32>,
    } else {
    }
    return
  }
  func.func @transform_0(%arg0: i32, %arg1: i32, %arg2: i32) -> (i32, i32) {
    %c0_i32 = arith.constant 0 : i32
    return %arg0, %arg2 : i32, i32
  }
  func.func @transform_1(%arg0: i32, %arg1: i32, %arg2: i32) -> (i32, i32) {
    %c0_i32 = arith.constant 0 : i32
    return %arg2, %arg1 : i32, i32
  }
  func.func @transform_2(%arg0: i32, %arg1: i32, %arg2: i32) -> (i32, i32) {
    %c0_i32 = arith.constant 0 : i32
    %c0_i32_0 = arith.constant 0 : i32
    return %c0_i32, %arg1 : i32, i32
  }
  func.func @transform_3(%arg0: i32, %arg1: i32, %arg2: i32) -> (i32, i32) {
    %c0_i32 = arith.constant 0 : i32
    return %arg0, %arg1 : i32, i32
  }
}

</mosaic_0001>

<bundles_post_ra>
// kernel: tpu_custom_call.1
= control target key start
LH: loop header
LB: loop body
LE: loop exit
PB: predicated region body
PF: predicated region fallthrough
CT: control target
= control target key end

     0   :  { %8 = vsyncpa [#allocation4], 0  ;;  %s1387_s0 = inlined_call_operand.hbm [shape: f32[128,128], index: 0, kind: input, shape index: {}]   ;;  %s1388_s1 = inlined_call_operand.hbm [shape: f32[128,512], index: 1, kind: input, shape index: {}]   ;;  %s1389_s2 = inlined_call_operand.hbm [shape: f32[1,512], index: 2, kind: input, shape index: {}]   ;;  %s1390_s3 = inlined_call_operand.hbm [shape: f32[128,512], index: 3, kind: output, shape index: {}]  }
   0x1   :  { %9 = vsyncpa [#allocation7], 0 }
   0x2   :  { %11 = vsyncpa [#allocation7 + $0x1], 0 }
   0x3   :  { %12 = vsyncpa [#allocation5], 0 }
   0x4   :  { %14 = vsyncpa [#allocation5 + $0x1], 0  ;;  %s1133_s12 = smov 0   ;;  %s1135_s13 = smov 0  }
   0x5   :  { %s1137_s14 = smov 0   ;;  %s1139_s15 = smov 0  }
   0x6   :  { %s1141_s16 = smov 0   ;;  %s1143_s17 = smov 0  }
   0x7 LB: > { %s35_s18 = sadd.s32 1, %s1097_s16  ;;  %s76_s19 = sadd.s32 1, %s1089_s14  ;;  %s1101_s17 = sphi %s1143_s17, %s20_s17   ;;  %s1097_s16 = sphi %s1141_s16, %s1412_s16   ;;  %s1093_s15 = sphi %s1139_s15, %s1411_s15   ;;  %s1089_s14 = sphi %s1137_s14, %s1410_s14   ;;  %s1085_s13 = sphi %s1135_s13, %s1409_s13   ;;  %s1081_s12 = sphi %s1133_s12, %s1408_s12  }
   0x8   : > { %p37_p0 = scmp.ge.s32.totalorder %s35_s18, 4  ;;  %p83_p1 = scmp.ne.s32.totalorder %s1089_s14, %s1085_s13 }
   0x9   : > { %p84_p2 = scmp.eq.s32.totalorder %s1101_s17, 0  ;;  %p877_p5 = scmp.lt.s32.totalorder %s1101_s17, 4 }
   0xa   : > { %s1414_s18 = smov (%p37_p0, %s35_s18), 0  ;;  %s184_s22 = sand.u32 1, %s1101_s17  }
   0xb   : > { %p1173_p3 = por %p84_p2, %p83_p1  ;;  %s72_s21 = ssub.s32 %s1097_s16, %s1414_s18 }
   0xc   : > { %p74_p4 = scmp.eq.s32.totalorder %s72_s21, 0  ;;  %s186_s23 = sand.u32 1, %s1089_s14  }
   0xd   : > { %s719_s25 = sshll.u32 %s186_s23, 7  ;;  %s720_s26 = sshll.u32 %s1097_s16, 7 }
   0xe   : > { %s1183_s24 = scalar_select %p74_p4, %s1089_s14, %s76_s19  }
   0xf   : > { %s196_s29 = scalar_lea.hbm %s1388_s1, %s720_s26  ;;  %s188_s30 = scalar_lea.vmem [#allocation6], %s719_s25 }
  0x10   : > { %s197_s4 = sshll.u32 %s188_s30, 4  ;;  %p1193_p6 = pnand %p877_p5, %p1173_p3  ;;  %s198_s4 = int_to_ptr.vmem [resolvable:$true] %s197_s4 }
  0x11   : > { %s1197_s6 = scalar_lea.sflag [#allocation7], %s184_s22  ;;  %s948_s7 = scalar_lea.vmem %s198_s4, 2048 }
  0x12   : > { %p937_p7 = pneg %p1193_p6  ;;  %p949_p8 = scmp.ne.s32.totalorder %s198_s4, %s948_s7 }
  0x13   : > { %s1103_s8 = smov [#allocation6]  }
  0x14   : > { %p951_p9 = pnand %p949_p8, %p937_p7  ;;  %s953_s9 = sshll.u32 %s1103_s8, 4  ;;  %s954_s9 = int_to_ptr.vmem [resolvable:$false] %s953_s9 }
  0x15   : > { %s955_s10 = scalar_lea.vmem %s954_s9, 4096  ;;  %p956_p11 = scmp.lt.s32.totalorder %s198_s4, %s954_s9 }
  0x16   : > { %p952_p10 = pneg %p951_p9  ;;  %p957_p12 = scmp.lt.s32.totalorder %s955_s10, %s948_s7 }
  0x18   : > { %p958_p13 = por %p957_p12, %p956_p11 }
  0x1a   : > { %p959_p0 = pnand %p958_p13, %p952_p10 }
  0x1c   : > { %962 = shalt.err (!%p959_p0)
}
  0x1d   : > { %s1104_s11 = smov 512   ;;  %s1391_s19 = smov 128  }
  0x1e   : > { %s1106_s20 = smov 8   ;;  %s1210_s21 = sadd.s32 4294967295, %s1101_s17  }
  0x1f   : > { %868 = dma.hbm_to_vmem [thread:$0]  (!%p1193_p6), %s196_s29, 2048, %s198_s4, %s1197_s6, %s1104_s11, %s1391_s19, %s1106_s20  }
  0x20   : > { %s715_s22 = sadd.s32 4294967294, %s1101_s17   ;;  %p89_p2 = scmp.ne.s32.totalorder %s1085_s13, %s1081_s12 }
  0x21   : > { %p1393_p3 = scmp.eq.s32.totalorder %s1210_s21, 0  ;;  %p141_p4 = scmp.eq.s32.totalorder %s1210_s21, 3 }
  0x22   : > { %p147_p5 = scmp.eq.s32.totalorder %s715_s22, 3  ;;  %p716_p9 = scmp.ge.s32.totalorder %s1101_s17, 1 }
  0x23   : > { %p1219_p8 = por %p1393_p3, %p89_p2  ;;  %p1227_p10 = por %p141_p4, %p83_p1 }
  0x24   : > { %p1231_p11 = por %p147_p5, %p89_p2  ;;  %p154_p12 = scmp.lt.s32.totalorder %s1101_s17, 5 }
  0x25   : > { %s1397_s25 = scalar_select %p1219_p8, 1, 0 }
  0x26   : > { %s1398_s26 = scalar_select %p1227_p10, 1, 0 }
  0x27   : > { %s1399_s27 = scalar_select %p1231_p11, 1, 0 }
  0x28   : > { %p1236_p13 = pnand %p716_p9, %p154_p12  ;;  %s1107_s29 = smov [#allocation3]  }
  0x29   : > { %s170_s30 = sshll.u32 %s1107_s29, 4  ;;  %s721_s4 = sshll.u32 %s1097_s16, 4  ;;  %s1246_s30 = int_to_ptr.vmem [resolvable:$true] %s170_s30 }
  0x2a   : > { %p861_p0 = pneg %p1236_p13  ;;  %s215_s9 = scalar_lea.hbm %s1389_s2, %s721_s4 }
  0x2b   : > { %s210_s10 = scalar_lea.vmem [#allocation8], %s186_s23  ;;  %s1108_s29 = smov [#allocation8]  }
  0x2c   : > { %s217_s11 = sshll.u32 %s210_s10, 4  ;;  %p1252_p1 = pnand %p861_p0, %p1393_p3  ;;  %s218_s11 = int_to_ptr.vmem [resolvable:$true] %s217_s11 }
  0x2d   : > { %s976_s19 = scalar_lea.vmem %s218_s11, 16  ;;  %s981_s7 = sshll.u32 %s1108_s29, 4  ;;  %s982_s7 = int_to_ptr.vmem [resolvable:$false] %s981_s7 }
  0x2e   : > { %p977_p2 = scmp.ne.s32.totalorder %s218_s11, %s976_s19  ;;  %s983_s4 = scalar_lea.vmem %s982_s7, 32 }
  0x2f   : > { %p984_p9 = scmp.lt.s32.totalorder %s218_s11, %s982_s7  ;;  %p985_p12 = scmp.lt.s32.totalorder %s983_s4, %s976_s19 }
  0x30   : > { %p979_p4 = pnand %p977_p2, %p937_p7 }
  0x31   : > { %p986_p11 = por %p985_p12, %p984_p9 }
  0x32   : > { %p980_p5 = pneg %p979_p4 }
  0x34   : > { %p987_p10 = pnand %p986_p11, %p980_p5 }
  0x36   : > { %990 = shalt.err (!%p987_p10)
}
  0x37   : > { %871 = dma.hbm_to_vmem [thread:$0]  (!%p1193_p6), %s215_s9, 16, %s218_s11, %s1197_s6  }
  0x38   : > { %p993_p7 = pneg %p1252_p1  ;;  %s1002_s23 = scalar_lea.vmem %s1246_s30, 2048 }
  0x39   : > { %p1003_p0 = scmp.ne.s32.totalorder %s1246_s30, %s1002_s23  ;;  %p1010_p3 = scmp.lt.s32.totalorder %s1246_s30, %s1246_s30 }
  0x3a   : > { %p1011_p8 = scmp.lt.s32.totalorder %s1002_s23, %s1002_s23 }
  0x3b   : > { %p1005_p2 = pnand %p1003_p0, %p993_p7 }
  0x3c   : > { %p1012_p9 = por %p1011_p8, %p1010_p3 }
  0x3d   : > { %p1006_p4 = pneg %p1005_p2 }
  0x3f   : > { %p1013_p11 = pnand %p1012_p9, %p1006_p4 }
  0x41   : > { %1016 = shalt.err (!%p1013_p11)
}
  0x42   : > { %s1402_s5 = smov 128   ;;  %226 = sbr.rel (%p1236_p13) target bundleno = 335 (0x14f), region = 32 }
  0x43   : > { %864 = dma.hbm_to_vmem [thread:$0]  (!%p1252_p1), %s1387_s0, 2048, %s1246_s30, [#allocation4], %s1402_s5, %s1402_s5, %s1106_s20  }
  0x44   : > { %p1403_p6 = scmp.eq.s32.totalorder (!%p1236_p13), %s1210_s21, 0 }
  0x47   : > { %1068 = dma.done.wait (%p1403_p6), [#allocation4], 2048   ;;  %p1404_p3 = pmov %p1403_p6 }
  0x48   : > { %s232_s8 = sand.u32 1, %s1210_s21   ;;  %s1285_s9 = sand.u32 1, %s1085_s13  }
  0x49   : > { %1070 = vsyncadd (%p1404_p3), [#allocation4], 4294965248  ;;  %s724_s10 = sshll.u32 %s1285_s9, 7  ;;  %s233_s11 = scalar_lea.sflag [#allocation7], %s232_s8 }
  0x4a   : > { %s1290_s20 = scalar_lea.vmem [#allocation6], %s724_s10  ;;  %p1405_p8 = scmp.ne.s32.totalorder %s1397_s25, 0 }
  0x4c   : > { %1072 = dma.done.wait (%p1405_p8), %s233_s11, 2064  }
  0x4d   : > { %1074 = vsyncadd (%p1405_p8), %s233_s11, 4294965232  ;;  %v341_v0 = vld [vmem:[%s1290_s20 + $0x78] sm:$0xff]  ;;  %v340_v1 = vld [vmem:[%s1290_s20 + $0x70] sm:$0xff]  ;;  %s244_s21 = scalar_lea.vmem [#allocation8], %s1285_s9  ;;  %s1315_s25 = scalar_lea.vmem [#allocation9], %s724_s10 }
  0x4e   : > { %763 = vmatprep.subr.mxu0 %v341_v0  ;;  %819 = vmatprep.subr.mxu1 %v341_v0  ;;  %v339_v2 = vld [vmem:[%s1290_s20 + $0x68] sm:$0xff]  ;;  %v338_v3 = vld [vmem:[%s1290_s20 + $0x60] sm:$0xff]  ;;  %v337_v4 = vld [vmem:[%s1290_s20 + $0x58] sm:$0xff]  ;;  %s728_s28 = sshll.u32 %s1093_s15, 7  ;;  %s593_s30 = sshll.u32 %s1315_s25, 4  ;;  %s1336_s30 = int_to_ptr.vmem [resolvable:$true] %s593_s30 }
  0x4f   : > { %764 = vmatpush3.msra.mxu0 %v341_v0  ;;  %835 = vmatpush3.msra.mxu1 %v341_v0  ;;  %v336_v5 = vld [vmem:[%s1290_s20 + $0x50] sm:$0xff]  ;;  %v335_v6 = vld [vmem:[%s1290_s20 + $0x48] sm:$0xff]  ;;  %v334_v7 = vld [vmem:[%s1290_s20 + $0x40] sm:$0xff]  ;;  %s1334_s15 = scalar_lea.hbm %s1390_s3, %s728_s28  ;;  %s578_s7 = scalar_lea.sflag [#allocation5], %s1285_s9 }
  0x50   : > { %765 = vmatprep.subr.mxu0 %v340_v1  ;;  %820 = vmatprep.subr.mxu1 %v340_v1  ;;  %v333_v8 = vld [vmem:[%s1290_s20 + $0x38] sm:$0xff]  ;;  %v332_v9 = vld [vmem:[%s1290_s20 + $0x30] sm:$0xff]  ;;  %v331_v10 = vld [vmem:[%s1290_s20 + $0x28] sm:$0xff]  ;;  %s1017_s4 = scalar_lea.vmem %s1336_s30, 2048  ;;  %p1406_p13 = scmp.ne.s32.totalorder %s1398_s26, 0 }
  0x51   : > { %766 = vmatpush3.msra.mxu0 %v340_v1  ;;  %836 = vmatpush3.msra.mxu1 %v340_v1  ;;  %v330_v11 = vld [vmem:[%s1290_s20 + $0x20] sm:$0xff]  ;;  %v329_v12 = vld [vmem:[%s1290_s20 + $0x18] sm:$0xff]  ;;  %v328_v13 = vld [vmem:[%s1290_s20 + $0x10] sm:$0xff]  ;;  %p1018_p10 = scmp.ne.s32.totalorder %s1336_s30, %s1017_s4  ;;  %s1109_s23 = smov [#allocation9]  }
  0x52   : > { %767 = vmatprep.subr.mxu0 %v339_v2  ;;  %821 = vmatprep.subr.mxu1 %v339_v2  ;;  %v327_v14 = vld [vmem:[%s1290_s20 + $0x8] sm:$0xff]  ;;  %v326_v15 = vld [vmem:[%s1290_s20] sm:$0xff]  ;;  %v312_v20 = vld [vmem:[#allocation3 + $0x10] sm:$0xff]  ;;  %s1021_s5 = sshll.u32 %s1109_s23, 4  ;;  %s1022_s5 = int_to_ptr.vmem [resolvable:$false] %s1021_s5 }
  0x53   : > { %768 = vmatpush3.msra.mxu0 %v339_v2  ;;  %837 = vmatpush3.msra.mxu1 %v339_v2  ;;  %v310_v16 = vld [vmem:[#allocation3] sm:$0xff]  ;;  %v311_v18 = vld [vmem:[#allocation3 + $0x8] sm:$0xff]  ;;  %v320_v21 = vld [vmem:[#allocation3 + $0x50] sm:$0xff]  ;;  %p1019_p1 = pnand %p1018_p10, %p1406_p13  ;;  %s1023_s19 = scalar_lea.vmem %s1022_s5, 4096 }
  0x54   : > { %769 = vmatprep.subr.mxu0 %v338_v3  ;;  %822 = vmatprep.subr.mxu1 %v338_v3  ;;  %v318_v17 = vld [vmem:[#allocation3 + $0x40] sm:$0xff]  ;;  %v319_v19 = vld [vmem:[#allocation3 + $0x48] sm:$0xff]  ;;  %v313_v22 = vld [vmem:[#allocation3 + $0x18] sm:$0xff]  ;;  %p1024_p12 = scmp.lt.s32.totalorder %s1336_s30, %s1022_s5  ;;  %p1025_p7 = scmp.lt.s32.totalorder %s1023_s19, %s1017_s4 }
  0x55   : > { %770 = vmatpush3.msra.mxu0 %v338_v3  ;;  %838 = vmatpush3.msra.mxu1 %v338_v3  ;;  %v321_v23 = vld [vmem:[#allocation3 + $0x58] sm:$0xff]  ;;  %v314_v24 = vld [vmem:[#allocation3 + $0x20] sm:$0xff]  ;;  %v315_v26 = vld [vmem:[#allocation3 + $0x28] sm:$0xff]  ;;  %p1020_p5 = pneg %p1019_p1 }
  0x56   : > { %771 = vmatprep.subr.mxu0 %v337_v4  ;;  %823 = vmatprep.subr.mxu1 %v337_v4  ;;  %v322_v25 = vld [vmem:[#allocation3 + $0x60] sm:$0xff]  ;;  %v323_v27 = vld [vmem:[#allocation3 + $0x68] sm:$0xff]  ;;  %v316_v28 = vld [vmem:[#allocation3 + $0x30] sm:$0xff]  ;;  %p1026_p0 = por %p1025_p7, %p1024_p12 }
  0x57   : > { %772 = vmatpush3.msra.mxu0 %v337_v4  ;;  %839 = vmatpush3.msra.mxu1 %v337_v4  ;;  %v324_v29 = vld [vmem:[#allocation3 + $0x70] sm:$0xff]  ;;  %v317_v30 = vld [vmem:[#allocation3 + $0x38] sm:$0xff]  ;;  %v726_v32 = vld [vmem:[%s244_s21] ss:$0 sm:$0xff] }
  0x58   : > { %773 = vmatprep.subr.mxu0 %v336_v5  ;;  %824 = vmatprep.subr.mxu1 %v336_v5  ;;  %v325_v31 = vld [vmem:[#allocation3 + $0x78] sm:$0xff]  ;;  %p1027_p2 = pnand %p1026_p0, %p1020_p5 }
  0x59   : > { %774 = vmatpush3.msra.mxu0 %v336_v5  ;;  %840 = vmatpush3.msra.mxu1 %v336_v5 }
  0x5a   : > { %775 = vmatprep.subr.mxu0 %v335_v6  ;;  %825 = vmatprep.subr.mxu1 %v335_v6 }
  0x5b   : > { %776 = vmatpush3.msra.mxu0 %v335_v6  ;;  %841 = vmatpush3.msra.mxu1 %v335_v6 }
  0x5c   : > { %777 = vmatprep.subr.mxu0 %v334_v7  ;;  %826 = vmatprep.subr.mxu1 %v334_v7 }
  0x5d   : > { %778 = vmatpush3.msra.mxu0 %v334_v7  ;;  %842 = vmatpush3.msra.mxu1 %v334_v7 }
  0x5e   : > { %779 = vmatprep.subr.mxu0 %v333_v8  ;;  %827 = vmatprep.subr.mxu1 %v333_v8 }
  0x5f   : > { %780 = vmatpush3.msra.mxu0 %v333_v8  ;;  %843 = vmatpush3.msra.mxu1 %v333_v8 }
  0x60   : > { %781 = vmatprep.subr.mxu0 %v332_v9  ;;  %828 = vmatprep.subr.mxu1 %v332_v9 }
  0x61   : > { %782 = vmatpush3.msra.mxu0 %v332_v9  ;;  %844 = vmatpush3.msra.mxu1 %v332_v9 }
  0x62   : > { %783 = vmatprep.subr.mxu0 %v331_v10  ;;  %829 = vmatprep.subr.mxu1 %v331_v10 }
  0x63   : > { %784 = vmatpush3.msra.mxu0 %v331_v10  ;;  %845 = vmatpush3.msra.mxu1 %v331_v10 }
  0x64   : > { %785 = vmatprep.subr.mxu0 %v330_v11  ;;  %830 = vmatprep.subr.mxu1 %v330_v11 }
  0x65   : > { %786 = vmatpush3.msra.mxu0 %v330_v11  ;;  %846 = vmatpush3.msra.mxu1 %v330_v11 }
  0x66   : > { %787 = vmatprep.subr.mxu0 %v329_v12  ;;  %831 = vmatprep.subr.mxu1 %v329_v12 }
  0x67   : > { %788 = vmatpush3.msra.mxu0 %v329_v12  ;;  %847 = vmatpush3.msra.mxu1 %v329_v12 }
  0x68   : > { %789 = vmatprep.subr.mxu0 %v328_v13  ;;  %832 = vmatprep.subr.mxu1 %v328_v13 }
  0x69   : > { %790 = vmatpush3.msra.mxu0 %v328_v13  ;;  %848 = vmatpush3.msra.mxu1 %v328_v13 }
  0x6a   : > { %791 = vmatprep.subr.mxu0 %v327_v14  ;;  %833 = vmatprep.subr.mxu1 %v327_v14 }
  0x6b   : > { %792 = vmatpush3.msra.mxu0 %v327_v14  ;;  %849 = vmatpush3.msra.mxu1 %v327_v14 }
  0x6c   : > { %793 = vmatprep.subr.mxu0 %v326_v15  ;;  %834 = vmatprep.subr.mxu1 %v326_v15 }
  0x6d   : > { %794 = vmatpush3.msra.mxu0 %v326_v15  ;;  %850 = vmatpush3.msra.mxu1 %v326_v15 }
  0x6e   : > { %795 = vmatprep.mubr.f32.mxu0 %v310_v16  ;;  %807 = vmatprep.mubr.f32.mxu1 %v318_v17 }
  0x6f   : > { %796 = vmatmul.mubr.f32.vlgmr.msra.gmra.mxu0 %v311_v18  ;;  %808 = vmatmul.mubr.f32.vlgmr.msra.gmra.mxu1 %v319_v19 }
  0x70   : > { %798 = vmatprep.mubr.f32.mxu0 %v312_v20  ;;  %810 = vmatprep.mubr.f32.mxu1 %v320_v21 }
  0x73   : > { %799 = vmatmul.mubr.f32.gmra.mxu0 %v313_v22  ;;  %811 = vmatmul.mubr.f32.gmra.mxu1 %v321_v23 }
  0x74   : > { %801 = vmatprep.mubr.f32.mxu0 %v314_v24  ;;  %813 = vmatprep.mubr.f32.mxu1 %v322_v25 }
  0x77   : > { %802 = vmatmul.mubr.f32.gmra.mxu0 %v315_v26  ;;  %814 = vmatmul.mubr.f32.gmra.mxu1 %v323_v27 }
  0x78   : > { %804 = vmatprep.mubr.f32.mxu0 %v316_v28  ;;  %816 = vmatprep.mubr.f32.mxu1 %v324_v29 }
  0x7b   : > { %805 = vmatmul.mubr.f32.gmra.mxu0 %v317_v30  ;;  %817 = vmatmul.mubr.f32.gmra.mxu1 %v325_v31 }
 0x12f   : > { %v797_v33 = vpop.f32.mrf.mxu0  ;;  %v809_v34 = vpop.f32.mrf.mxu1 }
 0x130   : > { %v546_v35 = vadd.f32 %v797_v33, %v726_v32  ;;  %v554_v36 = vadd.f32 %v809_v34, %v726_v32 }
 0x131   : > { %v408_v37 = vpop.f32.mrf.mxu0  ;;  %v448_v38 = vpop.f32.mrf.mxu1 }
 0x132   : > { %562 = vst [vmem:[%s1315_s25 + $0x8] sm:$0xff] %v546_v35  ;;  %570 = vst [vmem:[%s1315_s25 + $0x48] sm:$0xff] %v554_v36  ;;  %v545_v39 = vadd.f32 %v726_v32, %v408_v37  ;;  %v553_v40 = vadd.f32 %v726_v32, %v448_v38 }
 0x133   : > { %v800_v41 = vpop.f32.mrf.mxu0  ;;  %v812_v42 = vpop.f32.mrf.mxu1 }
 0x134   : > { %561 = vst [vmem:[%s1315_s25] sm:$0xff] %v545_v39  ;;  %569 = vst [vmem:[%s1315_s25 + $0x40] sm:$0xff] %v553_v40  ;;  %v548_v43 = vadd.f32 %v800_v41, %v726_v32  ;;  %v556_v44 = vadd.f32 %v812_v42, %v726_v32 }
 0x135   : > { %v418_v45 = vpop.f32.mrf.mxu0  ;;  %v458_v46 = vpop.f32.mrf.mxu1 }
 0x136   : > { %564 = vst [vmem:[%s1315_s25 + $0x18] sm:$0xff] %v548_v43  ;;  %572 = vst [vmem:[%s1315_s25 + $0x58] sm:$0xff] %v556_v44  ;;  %v547_v47 = vadd.f32 %v726_v32, %v418_v45  ;;  %v555_v48 = vadd.f32 %v726_v32, %v458_v46 }
 0x137   : > { %v803_v49 = vpop.f32.mrf.mxu0  ;;  %v815_v50 = vpop.f32.mrf.mxu1 }
 0x138   : > { %563 = vst [vmem:[%s1315_s25 + $0x10] sm:$0xff] %v547_v47  ;;  %571 = vst [vmem:[%s1315_s25 + $0x50] sm:$0xff] %v555_v48  ;;  %v550_v51 = vadd.f32 %v803_v49, %v726_v32  ;;  %v558_v52 = vadd.f32 %v815_v50, %v726_v32 }
 0x139   : > { %v428_v53 = vpop.f32.mrf.mxu0  ;;  %v468_v54 = vpop.f32.mrf.mxu1 }
 0x13a   : > { %566 = vst [vmem:[%s1315_s25 + $0x28] sm:$0xff] %v550_v51  ;;  %574 = vst [vmem:[%s1315_s25 + $0x68] sm:$0xff] %v558_v52  ;;  %v549_v55 = vadd.f32 %v726_v32, %v428_v53  ;;  %v557_v56 = vadd.f32 %v726_v32, %v468_v54 }
 0x13b   : > { %v806_v57 = vpop.f32.mrf.mxu0  ;;  %v818_v58 = vpop.f32.mrf.mxu1 }
 0x13c   : > { %565 = vst [vmem:[%s1315_s25 + $0x20] sm:$0xff] %v549_v55  ;;  %573 = vst [vmem:[%s1315_s25 + $0x60] sm:$0xff] %v557_v56  ;;  %v552_v59 = vadd.f32 %v806_v57, %v726_v32  ;;  %v560_v60 = vadd.f32 %v818_v58, %v726_v32 }
 0x13d   : > { %v438_v61 = vpop.f32.mrf.mxu0  ;;  %v478_v62 = vpop.f32.mrf.mxu1 }
 0x13e   : > { %568 = vst [vmem:[%s1315_s25 + $0x38] sm:$0xff] %v552_v59  ;;  %576 = vst [vmem:[%s1315_s25 + $0x78] sm:$0xff] %v560_v60  ;;  %v551_v63 = vadd.f32 %v726_v32, %v438_v61  ;;  %v559_v0 = vadd.f32 %v726_v32, %v478_v62 }
 0x140   : > { %567 = vst [vmem:[%s1315_s25 + $0x30] sm:$0xff] %v551_v63  ;;  %575 = vst [vmem:[%s1315_s25 + $0x70] sm:$0xff] %v559_v0 }
 0x141   : > { %1030 = shalt.err (!%p1027_p2)
}
 0x142   : > { %s1031_s6 = scalar_lea.hbm %s1334_s15, 2048  ;;  %s1035_s11 = scalar_lea.hbm %s1390_s3, 8192 }
 0x143   : > { %p1032_p4 = scmp.ne.s32.totalorder %s1334_s15, %s1031_s6  ;;  %p1036_p6 = scmp.lt.s32.totalorder %s1334_s15, %s1390_s3 }
 0x144   : > { %p1037_p3 = scmp.lt.s32.totalorder %s1035_s11, %s1031_s6 }
 0x145   : > { %p1033_p9 = pnand %p1032_p4, %p1406_p13 }
 0x146   : > { %p1038_p8 = por %p1037_p3, %p1036_p6 }
 0x147   : > { %p1034_p11 = pneg %p1033_p9 }
 0x149   : > { %p1039_p10 = pnand %p1038_p8, %p1034_p11 }
 0x14b   : > { %1042 = shalt.err (!%p1039_p10)
}
 0x14c   : > { %s1110_s25 = smov 128   ;;  %s1111_s28 = smov 512  }
 0x14d   : > { %s1112_s22 = smov 8  }
 0x14e   : > { %859 = dma.vmem_to_hbm [thread:$0]  (%p1406_p13), %s1336_s30, 2048, %s1334_s15, %s578_s7, %s1110_s25, %s1111_s28, %s1112_s22  }
 0x14f PF: > { %p879_p1 = scmp.ge.s32.totalorder %s1101_s17, 2  ;;  %s608_s29 = sand.u32 1, %s1081_s12  }
 0x150   : > { %p1407_p5 = scmp.ne.s32.totalorder %s1399_s27, 0  ;;  %s609_s4 = scalar_lea.sflag [#allocation5], %s608_s29 }
 0x152   : > { %p873_p12 = pnand %p879_p1, %p1407_p5 }
 0x154   : > { %p874_p7 = pneg %p873_p12 }
 0x156   : > { %1076 = dma.done.wait (%p874_p7), %s609_s4, 2048  }
 0x157   : > { %1078 = vsyncadd (%p874_p7), %s609_s4, 4294965248  ;;  %s20_s17 = sadd.s32 1, %s1101_s17   ;;  %s1408_s12 = smov %s1085_s13 }
 0x158   : > { %p17_p0 = scmp.ge.s32.totalorder %s20_s17, 6   ;;  %s1409_s13 = smov %s1089_s14 }
 0x159   : > { %s1410_s14 = smov %s1183_s24  ;;  %s1411_s15 = smov %s1097_s16 }
 0x15a   : > { %s1412_s16 = smov %s1414_s18  ;;  %19 = sbr.rel (!%p17_p0) target bundleno = 7 (0x7), region = 102 }
 0x15f   :  { %614 = vsyncpa [#allocation4], 1 }
 0x160   :  { %616 = vsyncpa [#allocation4 + $0x1], 1 }
 0x161   :  { %617 = vsyncpa [#allocation7], 1 }
 0x162   :  { %619 = vsyncpa [#allocation7 + $0x1], 1 }
 0x163   :  { %620 = vsyncpa [#allocation5], 1 }
 0x164   :  { %622 = vsyncpa [#allocation5 + $0x1], 1 }

</bundles_post_ra>
